<compile_context>
chip_gen: v7x
topology: tpu7x:2x2x1
jax: 0.10.0
libtpu: 0.0.40
codegen_flags: <defaults>
</compile_context>

<pallas_src>
import jax
import jax.numpy as jnp
from jax.experimental import pallas as pl
from jax.experimental.pallas import tpu as pltpu

# ---------------- configuration (small, deterministic) ----------------
BATCH        = 8
NOISE_DIM    = 16
IN_FEATURES  = 32          # real-data feature dim (= discriminator "features")
OUT_FEATURES = 32          # generator output dim  (= discriminator in_generated)
H0, H1       = 64, 64      # layer_sizes
NONNEG_END   = 16          # generator: softplus applied to columns [:NONNEG_END]

# ---- weight-slab row offsets (bf16 slab, width W_COLS, everything at col 0) ----
GW0_R  = 0                                   # (48, 64) generator layer 0
GW1_R  = GW0_R + NOISE_DIM + IN_FEATURES     # (64, 64) generator layer 1
GW2_R  = GW1_R + H0                          # (64, 32) generator head
DW0F_R = GW2_R + H1                          # (32, 64) disc layer 0, "features" half
DW0G_R = DW0F_R + IN_FEATURES                # (32, 64) disc layer 0, "generated" half
DW1_R  = DW0G_R + OUT_FEATURES               # (64, 64) disc layer 1
W_ROWS = DW1_R + H0                          # 304
W_COLS = 64

# ---- bias-slab rows (f32, shape (8,128) == one vreg) ----
R_GB0, R_GB1, R_GB2, R_ADD, R_DB0, R_DB1, R_DW2, R_DB2 = range(8)

OUT_W = 128  # lane-dense packed output width


def _softplus_stable(x):
    # softplus(x) = max(x, 0) + log1p(exp(-|x|))  -- single exp, no overflow branch
    return jnp.maximum(x, 0.0) + jnp.log1p(jnp.exp(-jnp.abs(x)))


# ---------------- fused Pallas kernel ----------------
def gan_fused_kernel(xin_ref, real_ref, w_ref, b_ref, out_ref):
    f32, bf16 = jnp.float32, jnp.bfloat16
    B = xin_ref.shape[0]

    b    = b_ref[...]                              # (8,128) f32, one vreg
    gb0  = b[R_GB0:R_GB0 + 1, 0:H0]
    gb1  = b[R_GB1:R_GB1 + 1, 0:H1]
    gb2  = b[R_GB2:R_GB2 + 1, 0:OUT_FEATURES]
    addv = b[R_ADD:R_ADD + 1, 0:OUT_FEATURES]
    db0  = b[R_DB0:R_DB0 + 1, 0:H0]
    db1  = b[R_DB1:R_DB1 + 1, 0:H1]
    dw2r = b[R_DW2:R_DW2 + 1, 0:H1]
    db2  = b[R_DB2:R_DB2 + 1, 0:1]

    # ---- generator: (noise|real) -> Linear/ReLU x2 -> Linear -> partial softplus -> +addv
    xin = xin_ref[...].astype(bf16)                                            # (B, 48)
    h = jnp.dot(xin, w_ref[GW0_R:GW1_R, :], preferred_element_type=f32) + gb0  # (B, H0)
    h = jnp.maximum(h, 0.0).astype(bf16)
    h = jnp.dot(h, w_ref[GW1_R:GW2_R, :], preferred_element_type=f32) + gb1    # (B, H1)
    h = jnp.maximum(h, 0.0).astype(bf16)
    y = jnp.dot(h, w_ref[GW2_R:DW0F_R, 0:OUT_FEATURES],
                preferred_element_type=f32) + gb2                              # (B, 32)

    col  = jax.lax.broadcasted_iota(jnp.int32, y.shape, 1)
    fake = jnp.where(col < NONNEG_END, _softplus_stable(y), y) + addv          # (B, 32) f32

    # ---- discriminator, both evaluations in one pass:
    #   disc_real: cat(real, real), disc_fake: cat(real, fake)
    #   (forward pass: .detach() on fake is numerically a no-op).
    # Shared real@dw0f "base"; [real; fake] stacked BEFORE the dw0g matmul.
    real_f = real_ref[...]                                                     # (B, 32) f32
    base = jnp.dot(real_f.astype(bf16), w_ref[DW0F_R:DW0G_R, :],
                   preferred_element_type=f32) + db0                           # (B, H0)
    stacked = jnp.concatenate([real_f, fake], axis=0).astype(bf16)             # (2B, 32)
    hd = jnp.dot(stacked, w_ref[DW0G_R:DW1_R, :], preferred_element_type=f32)  # (2B, H0)
    hd = hd + jnp.concatenate([base, base], axis=0)
    hd = jnp.maximum(hd, 0.0).astype(bf16)
    hd = jnp.dot(hd, w_ref[DW1_R:W_ROWS, :], preferred_element_type=f32) + db1 # (2B, H1)
    hd = jnp.maximum(hd, 0.0)

    # N=1 head as VPU mul + lane reduction (no MXU push, no padded (64,1) weight tile)
    logit = jnp.sum(hd * dw2r, axis=-1, keepdims=True) + db2                   # (2B, 1)
    prob  = jax.nn.sigmoid(logit)

    # ---- single lane-dense (B, 128) output slab: one unmasked full-lane store
    pad = jnp.zeros((B, OUT_W - OUT_FEATURES - 2), f32)
    out_ref[...] = jnp.concatenate([fake, prob[0:B], prob[B:2 * B], pad], axis=1)


# ---------------- wrapper (single gridless pallas_call) ----------------
def gan_forward(noise, real_data, w_slab, b_slab):
    B = noise.shape[0]
    xin = jnp.concatenate([noise, real_data], axis=1)            # (B, 48) gen input
    vmem = pl.BlockSpec(memory_space=pltpu.MemorySpace.VMEM)
    out = pl.pallas_call(
        gan_fused_kernel,
        out_shape=jax.ShapeDtypeStruct((B, OUT_W), jnp.float32),
        in_specs=[vmem, vmem, vmem, vmem],
        out_specs=vmem,
    )(xin, real_data, w_slab, b_slab)
    fake      = out[:, 0:OUT_FEATURES]
    disc_real = out[:, OUT_FEATURES:OUT_FEATURES + 1]
    disc_fake = out[:, OUT_FEATURES + 1:OUT_FEATURES + 2]
    return fake, disc_real, disc_fake


# ---------------- pure-JAX f32 reference (correctness check) ----------------
def gan_forward_ref(noise, real_data, ref_params):
    (gw0, gb0, gw1, gb1, gw2, gb2, addv, dw0, db0, dw1, db1, dw2, db2) = ref_params

    xin = jnp.concatenate([noise, real_data], axis=1)
    h = jnp.maximum(xin @ gw0 + gb0, 0.0)
    h = jnp.maximum(h @ gw1 + gb1, 0.0)
    y = h @ gw2 + gb2
    sp = jax.nn.softplus(y[:, :NONNEG_END])
    fake = jnp.concatenate([sp, y[:, NONNEG_END:]], axis=1) + addv

    def disc(x_gen):
        din = jnp.concatenate([real_data, x_gen], axis=1)
        h = jnp.maximum(din @ dw0 + db0, 0.0)
        h = jnp.maximum(h @ dw1 + db1, 0.0)
        return jax.nn.sigmoid(h @ dw2 + db2)

    return fake, disc(real_data), disc(fake)


# ---------------- deterministic parameter construction + packing ----------------
def init_params(key):
    def lin(k, fin, fout):
        kw, kb = jax.random.split(k)
        w = jax.random.normal(kw, (fin, fout), jnp.float32) * 0.1
        # snap to bf16-representable values (kernel stores weights as bf16)
        w = w.astype(jnp.bfloat16).astype(jnp.float32)
        b = jax.random.normal(kb, (fout,), jnp.float32) * 0.01
        return w, b

    keys = jax.random.split(key, 6)
    # generator MLP: (noise + in) -> 64 -> 64 -> out
    gw0, gb0 = lin(keys[0], NOISE_DIM + IN_FEATURES, H0)
    gw1, gb1 = lin(keys[1], H0, H1)
    gw2, gb2 = lin(keys[2], H1, OUT_FEATURES)
    addv = jnp.arange(OUT_FEATURES, dtype=jnp.float32) * 0.01
    # discriminator MLP: (in_features + in_generated) -> 64 -> 64 -> 1
    dw0, db0 = lin(keys[3], IN_FEATURES + OUT_FEATURES, H0)
    dw1, db1 = lin(keys[4], H0, H1)
    dw2, db2 = lin(keys[5], H1, 1)

    # ---- single bf16 weight slab (one HBM->VMEM DMA) ----
    w_slab = jnp.zeros((W_ROWS, W_COLS), jnp.float32)
    w_slab = w_slab.at[GW0_R:GW1_R, 0:H0].set(gw0)
    w_slab = w_slab.at[GW1_R:GW2_R, 0:H1].set(gw1)
    w_slab = w_slab.at[GW2_R:DW0F_R, 0:OUT_FEATURES].set(gw2)
    w_slab = w_slab.at[DW0F_R:DW0G_R, 0:H0].set(dw0[:IN_FEATURES])
    w_slab = w_slab.at[DW0G_R:DW1_R, 0:H0].set(dw0[IN_FEATURES:])
    w_slab = w_slab.at[DW1_R:W_ROWS, 0:H1].set(dw1)
    w_slab = w_slab.astype(jnp.bfloat16)

    # ---- single f32 bias/vector slab: exactly one (8,128) vreg ----
    b_slab = jnp.zeros((8, 128), jnp.float32)
    b_slab = b_slab.at[R_GB0, 0:H0].set(gb0)
    b_slab = b_slab.at[R_GB1, 0:H1].set(gb1)
    b_slab = b_slab.at[R_GB2, 0:OUT_FEATURES].set(gb2)
    b_slab = b_slab.at[R_ADD, 0:OUT_FEATURES].set(addv)
    b_slab = b_slab.at[R_DB0, 0:H0].set(db0)
    b_slab = b_slab.at[R_DB1, 0:H1].set(db1)
    b_slab = b_slab.at[R_DW2, 0:H1].set(dw2[:, 0])
    b_slab = b_slab.at[R_DB2, 0].set(db2[0])

    ref_params = (gw0, gb0, gw1, gb1, gw2, gb2, addv.reshape(1, -1),
                  dw0, db0, dw1, db1, dw2, db2)
    return w_slab, b_slab, ref_params


if __name__ == "__main__":
    key = jax.random.PRNGKey(0)
    kp, kn, kx = jax.random.split(key, 3)
    w_slab, b_slab, ref_params = init_params(kp)

    noise     = jax.random.normal(kn, (BATCH, NOISE_DIM), jnp.float32)
    real_data = jax.random.normal(kx, (BATCH, IN_FEATURES), jnp.float32)

    fwd = jax.jit(gan_forward)
    fake_data, disc_real, disc_fake = fwd(noise, real_data, w_slab, b_slab)
    jax.block_until_ready((fake_data, disc_real, disc_fake))

    assert fake_data.shape == (BATCH, OUT_FEATURES)
    assert disc_real.shape == (BATCH, 1)
    assert disc_fake.shape == (BATCH, 1)

    # loose-tolerance correctness check vs pure-f32 reference
    # (kernel uses bf16 MXU operands with f32 accumulation -> small expected drift)
    rf, rr, rk = gan_forward_ref(noise, real_data, ref_params)
    assert jnp.allclose(fake_data, rf, atol=2e-2, rtol=2e-2)
    assert jnp.allclose(disc_real, rr, atol=2e-2, rtol=2e-2)
    assert jnp.allclose(disc_fake, rk, atol=2e-2, rtol=2e-2)

    print("KERNEL_OK")
</pallas_src>

<mosaic_0001>
module attributes {stable_mosaic.version = 11 : i64} {
  func.func @gan_fused_kernel(%arg0: memref<8x48xf32, #tpu.memory_space<vmem>>, %arg1: memref<8x32xf32, #tpu.memory_space<vmem>>, %arg2: memref<304x64xbf16, #tpu.memory_space<vmem>>, %arg3: memref<8x128xf32, #tpu.memory_space<vmem>>, %arg4: memref<8x128xf32, #tpu.memory_space<vmem>>) attributes {dimension_semantics = [], scalar_prefetch = 0 : i64, scratch_operands = 0 : i64, tpu.core_type = #tpu.core_type<tc>} {
    %c0 = arith.constant 0 : index
    %c0_0 = arith.constant 0 : index
    %0 = vector.load %arg3[%c0, %c0_0] : memref<8x128xf32, #tpu.memory_space<vmem>>, vector<8x128xf32>
    %1 = vector.extract_strided_slice %0 {offsets = [0, 0], sizes = [1, 64], strides = [1, 1]} : vector<8x128xf32> to vector<1x64xf32>
    %2 = vector.extract_strided_slice %0 {offsets = [1, 0], sizes = [1, 64], strides = [1, 1]} : vector<8x128xf32> to vector<1x64xf32>
    %3 = vector.extract_strided_slice %0 {offsets = [2, 0], sizes = [1, 32], strides = [1, 1]} : vector<8x128xf32> to vector<1x32xf32>
    %4 = vector.extract_strided_slice %0 {offsets = [3, 0], sizes = [1, 32], strides = [1, 1]} : vector<8x128xf32> to vector<1x32xf32>
    %5 = vector.extract_strided_slice %0 {offsets = [4, 0], sizes = [1, 64], strides = [1, 1]} : vector<8x128xf32> to vector<1x64xf32>
    %6 = vector.extract_strided_slice %0 {offsets = [5, 0], sizes = [1, 64], strides = [1, 1]} : vector<8x128xf32> to vector<1x64xf32>
    %7 = vector.extract_strided_slice %0 {offsets = [6, 0], sizes = [1, 64], strides = [1, 1]} : vector<8x128xf32> to vector<1x64xf32>
    %8 = vector.extract_strided_slice %0 {offsets = [7, 0], sizes = [1, 1], strides = [1, 1]} : vector<8x128xf32> to vector<1x1xf32>
    %c0_1 = arith.constant 0 : index
    %c0_2 = arith.constant 0 : index
    %9 = vector.load %arg0[%c0_1, %c0_2] : memref<8x48xf32, #tpu.memory_space<vmem>>, vector<8x48xf32>
    %10 = arith.truncf %9 : vector<8x48xf32> to vector<8x48xbf16>
    %c0_3 = arith.constant 0 : index
    %c0_4 = arith.constant 0 : index
    %11 = vector.load %arg2[%c0_3, %c0_4] : memref<304x64xbf16, #tpu.memory_space<vmem>>, vector<48x64xbf16>
    %cst = arith.constant dense<0.000000e+00> : vector<8x64xf32>
    %12 = tpu.matmul %10, %11, %cst {dimension_numbers = #tpu.dot_dimension_numbers<[1], [0], [0], [1], [0, 0, 1, 1], [], []>} : vector<8x48xbf16>, vector<48x64xbf16>, vector<8x64xf32> -> vector<8x64xf32>
    %13 = vector.broadcast %1 : vector<1x64xf32> to vector<8x64xf32>
    %14 = arith.addf %12, %13 : vector<8x64xf32>
    %cst_5 = arith.constant 0.000000e+00 : f32
    %15 = vector.broadcast %cst_5 : f32 to vector<8x64xf32>
    %16 = arith.maximumf %14, %15 : vector<8x64xf32>
    %17 = arith.truncf %16 : vector<8x64xf32> to vector<8x64xbf16>
    %c48 = arith.constant 48 : index
    %c0_6 = arith.constant 0 : index
    %18 = vector.load %arg2[%c48, %c0_6] : memref<304x64xbf16, #tpu.memory_space<vmem>>, vector<64x64xbf16>
    %cst_7 = arith.constant dense<0.000000e+00> : vector<8x64xf32>
    %19 = tpu.matmul %17, %18, %cst_7 {dimension_numbers = #tpu.dot_dimension_numbers<[1], [0], [0], [1], [0, 0, 1, 1], [], []>} : vector<8x64xbf16>, vector<64x64xbf16>, vector<8x64xf32> -> vector<8x64xf32>
    %20 = vector.broadcast %2 : vector<1x64xf32> to vector<8x64xf32>
    %21 = arith.addf %19, %20 : vector<8x64xf32>
    %cst_8 = arith.constant 0.000000e+00 : f32
    %22 = vector.broadcast %cst_8 : f32 to vector<8x64xf32>
    %23 = arith.maximumf %21, %22 : vector<8x64xf32>
    %24 = arith.truncf %23 : vector<8x64xf32> to vector<8x64xbf16>
    %c112 = arith.constant 112 : index
    %c0_9 = arith.constant 0 : index
    %25 = vector.load %arg2[%c112, %c0_9] : memref<304x64xbf16, #tpu.memory_space<vmem>>, vector<64x32xbf16>
    %cst_10 = arith.constant dense<0.000000e+00> : vector<8x32xf32>
    %26 = tpu.matmul %24, %25, %cst_10 {dimension_numbers = #tpu.dot_dimension_numbers<[1], [0], [0], [1], [0, 0, 1, 1], [], []>} : vector<8x64xbf16>, vector<64x32xbf16>, vector<8x32xf32> -> vector<8x32xf32>
    %27 = vector.broadcast %3 : vector<1x32xf32> to vector<8x32xf32>
    %28 = arith.addf %26, %27 : vector<8x32xf32>
    %29 = tpu.iota {dimensions = array<i32: 1>} : vector<8x32xi32>
    %c16_i32 = arith.constant 16 : i32
    %30 = vector.broadcast %c16_i32 : i32 to vector<8x32xi32>
    %31 = arith.cmpi slt, %29, %30 : vector<8x32xi32>
    %cst_11 = arith.constant 0.000000e+00 : f32
    %32 = vector.broadcast %cst_11 : f32 to vector<8x32xf32>
    %33 = arith.maximumf %28, %32 : vector<8x32xf32>
    %34 = math.absf %28 : vector<8x32xf32>
    %cst_12 = arith.constant 0.000000e+00 : f32
    %35 = vector.broadcast %cst_12 : f32 to vector<8x32xf32>
    %36 = arith.subf %35, %34 : vector<8x32xf32>
    %37 = math.exp %36 : vector<8x32xf32>
    %38 = math.log1p %37 : vector<8x32xf32>
    %39 = arith.addf %33, %38 : vector<8x32xf32>
    %40 = arith.select %31, %39, %28 : vector<8x32xi1>, vector<8x32xf32>
    %41 = vector.broadcast %4 : vector<1x32xf32> to vector<8x32xf32>
    %42 = arith.addf %40, %41 : vector<8x32xf32>
    %c0_13 = arith.constant 0 : index
    %c0_14 = arith.constant 0 : index
    %43 = vector.load %arg1[%c0_13, %c0_14] : memref<8x32xf32, #tpu.memory_space<vmem>>, vector<8x32xf32>
    %44 = arith.truncf %43 : vector<8x32xf32> to vector<8x32xbf16>
    %c176 = arith.constant 176 : index
    %c0_15 = arith.constant 0 : index
    %45 = vector.load %arg2[%c176, %c0_15] : memref<304x64xbf16, #tpu.memory_space<vmem>>, vector<32x64xbf16>
    %cst_16 = arith.constant dense<0.000000e+00> : vector<8x64xf32>
    %46 = tpu.matmul %44, %45, %cst_16 {dimension_numbers = #tpu.dot_dimension_numbers<[1], [0], [0], [1], [0, 0, 1, 1], [], []>} : vector<8x32xbf16>, vector<32x64xbf16>, vector<8x64xf32> -> vector<8x64xf32>
    %47 = vector.broadcast %5 : vector<1x64xf32> to vector<8x64xf32>
    %48 = arith.addf %46, %47 : vector<8x64xf32>
    %49 = tpu.concatenate %43, %42 in 0 : vector<8x32xf32>, vector<8x32xf32> -> vector<16x32xf32>
    %50 = arith.truncf %49 : vector<16x32xf32> to vector<16x32xbf16>
    %c208 = arith.constant 208 : index
    %c0_17 = arith.constant 0 : index
    %51 = vector.load %arg2[%c208, %c0_17] : memref<304x64xbf16, #tpu.memory_space<vmem>>, vector<32x64xbf16>
    %cst_18 = arith.constant dense<0.000000e+00> : vector<16x64xf32>
    %52 = tpu.matmul %50, %51, %cst_18 {dimension_numbers = #tpu.dot_dimension_numbers<[1], [0], [0], [1], [0, 0, 1, 1], [], []>} : vector<16x32xbf16>, vector<32x64xbf16>, vector<16x64xf32> -> vector<16x64xf32>
    %53 = tpu.concatenate %48, %48 in 0 : vector<8x64xf32>, vector<8x64xf32> -> vector<16x64xf32>
    %54 = arith.addf %52, %53 : vector<16x64xf32>
    %cst_19 = arith.constant 0.000000e+00 : f32
    %55 = vector.broadcast %cst_19 : f32 to vector<16x64xf32>
    %56 = arith.maximumf %54, %55 : vector<16x64xf32>
    %57 = arith.truncf %56 : vector<16x64xf32> to vector<16x64xbf16>
    %c240 = arith.constant 240 : index
    %c0_20 = arith.constant 0 : index
    %58 = vector.load %arg2[%c240, %c0_20] : memref<304x64xbf16, #tpu.memory_space<vmem>>, vector<64x64xbf16>
    %cst_21 = arith.constant dense<0.000000e+00> : vector<16x64xf32>
    %59 = tpu.matmul %57, %58, %cst_21 {dimension_numbers = #tpu.dot_dimension_numbers<[1], [0], [0], [1], [0, 0, 1, 1], [], []>} : vector<16x64xbf16>, vector<64x64xbf16>, vector<16x64xf32> -> vector<16x64xf32>
    %60 = vector.broadcast %6 : vector<1x64xf32> to vector<16x64xf32>
    %61 = arith.addf %59, %60 : vector<16x64xf32>
    %cst_22 = arith.constant 0.000000e+00 : f32
    %62 = vector.broadcast %cst_22 : f32 to vector<16x64xf32>
    %63 = arith.maximumf %61, %62 : vector<16x64xf32>
    %64 = vector.broadcast %7 : vector<1x64xf32> to vector<16x64xf32>
    %65 = arith.mulf %63, %64 : vector<16x64xf32>
    %cst_23 = arith.constant dense<0.000000e+00> : vector<16xf32>
    %66 = vector.multi_reduction <add>, %65, %cst_23 [1] : vector<16x64xf32> to vector<16xf32>
    %67 = vector.shape_cast %66 : vector<16xf32> to vector<16x1xf32>
    %68 = vector.broadcast %8 : vector<1x1xf32> to vector<16x1xf32>
    %69 = arith.addf %67, %68 : vector<16x1xf32>
    %70 = arith.negf %69 : vector<16x1xf32>
    %71 = math.exp %70 : vector<16x1xf32>
    %cst_24 = arith.constant 1.000000e+00 : f32
    %72 = vector.broadcast %cst_24 : f32 to vector<16x1xf32>
    %73 = arith.addf %72, %71 : vector<16x1xf32>
    %74 = arith.divf %72, %73 : vector<16x1xf32>
    %cst_25 = arith.constant 0.000000e+00 : f32
    %75 = vector.broadcast %cst_25 : f32 to vector<8x94xf32>
    %76 = vector.extract_strided_slice %74 {offsets = [0, 0], sizes = [8, 1], strides = [1, 1]} : vector<16x1xf32> to vector<8x1xf32>
    %77 = vector.extract_strided_slice %74 {offsets = [8, 0], sizes = [8, 1], strides = [1, 1]} : vector<16x1xf32> to vector<8x1xf32>
    %78 = tpu.concatenate %42, %76, %77, %75 in 1 : vector<8x32xf32>, vector<8x1xf32>, vector<8x1xf32>, vector<8x94xf32> -> vector<8x128xf32>
    %c0_26 = arith.constant 0 : index
    %c0_27 = arith.constant 0 : index
    %79 = vector.load %arg4[%c0_26, %c0_27] : memref<8x128xf32, #tpu.memory_space<vmem>>, vector<8x128xf32>
    tpu.vector_store %arg4[%c0_26, %c0_27], %78 {strides = array<i32>} : memref<8x128xf32, #tpu.memory_space<vmem>>, vector<8x128xf32>,
    return
  }
}

</mosaic_0001>

<bundles_post_ra>
// kernel: gan_forward.1
= control target key start
LH: loop header
LB: loop body
LE: loop exit
PB: predicated region body
PF: predicated region fallthrough
CT: control target
= control target key end

     0   :  { %v689_v0 = vmov 0.0   ;;  %vm690_vm0 = vmmov 0   ;;  %vm49_vm1 = vcmask 392192   ;;  %v27_v12 = vlaneseq  ;;  %s692_s29 = smov 33   ;;  %s852_s2 = inlined_call_operand.vmem [shape: bf16[304,64], index: 2, kind: input, shape index: {}]   ;;  %s853_s0 = inlined_call_operand.vmem [shape: f32[8,48], index: 0, kind: input, shape index: {}]   ;;  %s854_s3 = inlined_call_operand.vmem [shape: f32[8,128], index: 3, kind: input, shape index: {}]   ;;  %s855_s1 = inlined_call_operand.vmem [shape: f32[8,32], index: 1, kind: input, shape index: {}]   ;;  %s856_s4 = inlined_call_operand.vmem [shape: f32[8,128], index: 4, kind: output, shape index: {}]  }
   0x1   :  { %592 = vmatprep.subr.bf16.mxu0 %v689_v0  ;;  %v658_v1 = vld [vmem:[%s852_s2] sm:$0xff]   ;;  %598 = vmatprep.mubr.msk.bf16.mxu0 %vm690_vm0, %v689_v0  ;;  %v659_v2 = vld [vmem:[%s852_s2 + $0x8] sm:$0xff]   ;;  %v660_v3 = vld [vmem:[%s852_s2 + $0x10] sm:$0xff]   ;;  %vm131_vm2 = vcmask 523264   ;;  %vm302_vm3 = vcmask 261120   ;;  %vm531_vm6 = vcmask 269312  }
   0x2   :  { %602 = vmatprep.subr.bf16.mxu1 %v689_v0  ;;  %610 = vmatprep.mubr.msk.bf16.mxu1 %vm690_vm0, %v689_v0  ;;  %v661_v4 = vld [vmem:[%s852_s2 + $0x18] sm:$0xff]   ;;  %v19_v5 = vld [vmem:[%s853_s0] sm:$0xff]  ;;  %v663_v8 = vld [vmem:[%s852_s2 + $0x28] sm:$0xff]   ;;  %v766_v13 = vshrl.u32 %v27_v12, 7  ;;  %v257_v58 = vand.u32 127, %v27_v12  ;;  %vm533_vm7 = vcmask 277504  }
   0x3   :  { %593 = vmatpush3.bf16.msra.mxu0 %v658_v1  ;;  %v662_v6 = vld [vmem:[%s852_s2 + $0x20] sm:$0xff]   ;;  %603 = vmatpush3.bf16.msra.mxu1 %v661_v4  ;;  %v20_v7 = vpack.c.bf16 %v19_v5, %v19_v5  ;;  %v664_v9 = vld [vmem:[%s852_s2 + $0x30] sm:$0xff]   ;;  %v665_v10 = vld [vmem:[%s852_s2 + $0x38] sm:$0xff]  }
   0x4   :  { %594 = vmatprep.subr.bf16.mxu0 %v689_v0  ;;  %604 = vmatprep.subr.bf16.mxu1 %v689_v0  ;;  %v666_v11 = vld [vmem:[%s852_s2 + $0x40] sm:$0xff]   ;;  %v29_v14 = vsub.s32 0, %v766_v13  ;;  %v667_v24 = vld [vmem:[%s852_s2 + $0x48] sm:$0xff]   ;;  %v668_v25 = vld [vmem:[%s852_s2 + $0x50] sm:$0xff]   ;;  %v105_v26 = vsub.s32 1, %v766_v13  ;;  %v187_v43 = vsub.s32 2, %v766_v13 }
   0x5   :  { %v772_v15 = vld [vmem:[%s854_s3] sm:$0xff]  ;;  %v669_v35 = vld [vmem:[%s852_s2 + $0x58] sm:$0xff]   ;;  %v671_v39 = vld [vmem:[%s852_s2 + $0x68] sm:$0xff]   ;;  %v277_v59 = vsub.s32 3, %v766_v13  ;;  %vm258_vm5 = vcmp.lt.s32.totalorder %v257_v58, 16 }
   0x6   :  { %v30_v16 = vrot.slane %v772_v15, %v29_v14  ;;  %v106_v27 = vrot.slane %v772_v15, %v105_v26  ;;  %v670_v36 = vld [vmem:[%s852_s2 + $0x60] sm:$0xff]   ;;  %v672_v40 = vld [vmem:[%s852_s2 + $0x70] sm:$0xff]   ;;  %v673_v41 = vld [vmem:[%s852_s2 + $0x78] sm:$0xff]   ;;  %v188_v44 = vrot.slane %v772_v15, %v187_v43  ;;  %v288_v14 = vsub.s32 4, %v766_v13 }
   0x7   :  { %595 = vmatpush3.bf16.msra.mxu0 %v659_v2  ;;  %605 = vmatpush3.bf16.msra.mxu1 %v662_v6  ;;  %v280_v37 = vld [vmem:[%s855_s1] sm:$0xff]  ;;  %v278_v2 = vrot.slane %v772_v15, %v277_v59  ;;  %v676_v12 = vld [vmem:[%s852_s2 + $0x90] sm:$0xff]  }
   0x8   :  { %596 = vmatprep.subr.bf16.mxu0 %v689_v0  ;;  %606 = vmatprep.subr.bf16.mxu1 %v689_v0  ;;  %v281_v38 = vpack.c.bf16 %v280_v37, %v280_v37  ;;  %v674_v42 = vld [vmem:[%s852_s2 + $0x80] sm:$0xff]  }
   0xb   :  { %597 = vmatpush3.bf16.msra.mxu0 %v660_v3  ;;  %607 = vmatpush3.bf16.msra.mxu1 %v663_v8 }
   0xc   :  { %614 = vmatprep.subr.bf16.mxu0 %v689_v0  ;;  %608 = vmatprep.subr.bf16.mxu1 %v689_v0 }
   0xe   :  { %599 = vmatmul.mubr.msk.bf16.vlgmr.msra.gmra.mrb[0].mxu0 %vm49_vm1, %v20_v7 }
   0xf   :  { %622 = vmatprep.mubr.msk.bf16.mxu0 %vm690_vm0, %v689_v0  ;;  %609 = vmatpush3.bf16.msra.mxu1 %v664_v9 }
  0x10   :  { %626 = vmatprep.subr.bf16.mxu1 %v689_v0  ;;  %615 = vmatpush3.bf16.msra.mxu0 %v665_v10 }
  0x11   :  { %616 = vmatprep.subr.bf16.mxu0 %v689_v0 }
  0x14   :  { %617 = vmatpush3.bf16.msra.mxu0 %v666_v11  ;;  %v675_v11 = vld [vmem:[%s852_s2 + $0x88] sm:$0xff]   ;;  %s691_s2 = smov 32  }
  0x15   :  { %618 = vmatprep.subr.bf16.mxu0 %v689_v0 }
  0x18   :  { %619 = vmatpush3.bf16.msra.mxu0 %v667_v24 }
  0x19   :  { %620 = vmatprep.subr.bf16.mxu0 %v689_v0 }
  0x1c   :  { %621 = vmatpush3.bf16.msra.mxu0 %v668_v25 }
  0x1d   :  { %642 = vmatprep.subr.bf16.mxu0 %v689_v0 }
  0xe1   :  { %v87_v17 = vpop.f32.mrb[0].mxu0 }
  0xe2   :  { %v88_v18 = vadd.f32 %v87_v17, %v30_v16  ;;  %v600_v19 = vpop.f32.mrb[1].mxu0  ;;  %v289_v16 = vrot.slane %v772_v15, %v288_v14 }
  0xe3   :  { %v90_v20 = vpop.f32.mrb[2].mxu0 }
  0xe4   :  { %v93_v21 = vmax.f32 %v88_v18, 0.0  ;;  %v601_v22 = vpop.f32.mrb[3].mxu0 }
  0xe6   :  { %v94_v23 = vpack.c.bf16 %v93_v21, %v93_v21 }
  0xe8   :  { %611 = vmatmul.mubr.msk.bf16.vlgmr.msra.gmra.mrb[0].mxu1 %vm131_vm2, %v94_v23 }
  0xe9   :  { %630 = vmatprep.mubr.msk.bf16.mxu1 %vm690_vm0, %v689_v0  ;;  %627 = vmatpush3.bf16.msra.mxu1 %v669_v35 }
  0xea   :  { %628 = vmatprep.subr.bf16.mxu1 %v689_v0 }
  0xed   :  { %629 = vmatpush3.bf16.msra.mxu1 %v670_v36 }
  0xee   :  { %634 = vmatprep.subr.bf16.mxu1 %v689_v0 }
  0xf0   :  { %631 = vmatmul.mubr.msk.bf16.vlgmr.msra.gmra.mrb[4].mxu1 %vm302_vm3, %v281_v38 }
  0xf1   :  { %638 = vmatprep.mubr.msk.bf16.mxu1 %vm690_vm0, %v689_v0  ;;  %635 = vmatpush3.bf16.msra.mxu1 %v671_v39 }
  0xf2   :  { %636 = vmatprep.subr.bf16.mxu1 %v689_v0 }
  0xf5   :  { %637 = vmatpush3.bf16.msra.mxu1 %v672_v40 }
 0x1bb   :  { %v169_v28 = vpop.f32.mrb[0].mxu1 }
 0x1bc   :  { %v170_v29 = vadd.f32 %v169_v28, %v106_v27  ;;  %v612_v30 = vpop.f32.mrb[1].mxu1  ;;  %v494_v28 = vsub.s32 6, %v766_v13 }
 0x1bd   :  { %v172_v31 = vpop.f32.mrb[2].mxu1 }
 0x1be   :  { %v175_v32 = vmax.f32 %v170_v29, 0.0  ;;  %v613_v33 = vpop.f32.mrb[3].mxu1 }
 0x1c0   :  { %v176_v34 = vpack.c.bf16 %v175_v32, %v175_v32  ;;  %v495_v32 = vrot.slane %v772_v15, %v494_v28 }
 0x1c2   :  { %623 = vmatmul.mubr.msk.bf16.vlgmr.msra.gmra.mrb[4].mxu0 %vm131_vm2, %v176_v34 }
 0x1c3   :  { %650 = vmatprep.mubr.msk.bf16.mxu0 %vm690_vm0, %v689_v0  ;;  %643 = vmatpush3.bf16.msra.mxu0 %v673_v41  ;;  %v340_v7 = vpop.f32.mrb[4].mxu1 }
 0x1c4   :  { %644 = vmatprep.subr.bf16.mxu0 %v689_v0  ;;  %v632_v8 = vpop.f32.mrb[5].mxu1  ;;  %v341_v17 = vadd.f32 %v340_v7, %v289_v16 }
 0x1c5   :  { %v343_v9 = vpop.f32.mrb[6].mxu1 }
 0x1c6   :  { %v633_v10 = vpop.f32.mrb[7].mxu1 }
 0x1c7   :  { %645 = vmatpush3.bf16.msra.mxu0 %v674_v42  ;;  %v506_v42 = vsub.s32 7, %v766_v13 }
 0x1c8   :  { %646 = vmatprep.subr.bf16.mxu0 %v689_v0 }
 0x1c9   :  { %v507_v43 = vrot.slane %v772_v15, %v506_v42 }
 0x1cb   :  { %647 = vmatpush3.bf16.msra.mxu0 %v675_v11 }
 0x1cc   :  { %648 = vmatprep.subr.bf16.mxu0 %v689_v0  ;;  %v420_v0 = vsub.s32 5, %v766_v13 }
 0x1ce   :  { %v421_v27 = vrot.slane %v772_v15, %v420_v0 }
 0x1cf   :  { %649 = vmatpush3.bf16.msra.mxu0 %v676_v12 }
 0x295   :  { %v250_v45 = vpop.f32.mrb[4].mxu0 }
 0x296   :  { %v251_v46 = vadd.f32 %v250_v45, %v188_v44  ;;  %v624_v47 = vpop.f32.mrb[5].mxu0 }
 0x297   :  { %v253_v48 = vpop.f32.mrb[6].mxu0 }
 0x298   :  { %v260_v49 = vand.u32 2147483647, %v251_v46  ;;  %v625_v50 = vpop.f32.mrb[7].mxu0  ;;  %v259_v63 = vmax.f32 %v251_v46, 0.0 }
 0x29a   :  { %v261_v51 = vsub.f32 0.0, %v260_v49 }
 0x29c   :  { %v262_v52 = vmul.f32 1.442695, %v261_v51 }
 0x29e   :  { %677 = vpow2.f32 %v262_v52 }
 0x2a8   :  { %v678_v53 = vpop.eup %677 }
 0x2a9   :  { %v264_v54 = vadd.f32 1.0, %v678_v53  ;;  %v267_v55 = vmul.f32 -0.5, %v678_v53  ;;  %v270_v57 = vand.u32 2147483647, %v678_v53 }
 0x2ab   :  { %679 = vlog2.f32 %v264_v54  ;;  %v268_v56 = vadd.f32 1.0, %v267_v55  ;;  %vm271_vm4 = vcmp.lt.f32.partialorder %v270_v57, 0.0004427343 }
 0x2ad   :  { %v269_v62 = vmul.f32 %v678_v53, %v268_v56 }
 0x2b5   :  { %v680_v60 = vpop.eup %679 }
 0x2b6   :  { %v266_v61 = vmul.f32 0.6931472, %v680_v60 }
 0x2b8   :  { %v272_v1 = vsel %vm271_vm4, %v269_v62, %v266_v61 }
 0x2b9   :  { %v273_v3 = vadd.f32 %v272_v1, %v259_v63 }
 0x2bb   :  { %v274_v4 = vsel %vm258_vm5, %v273_v3, %v251_v46 }
 0x2bc   :  { %v825_v5 = vadd.f32 %v278_v2, %v274_v4 }
 0x2be   :  { %v346_v6 = vpack.c.bf16 %v825_v5, %v280_v37 }
 0x2c0   :  { %639 = vmatmul.mubr.msk.bf16.vlgmr.msra.gmra.mrb[8].mxu1 %vm302_vm3, %v346_v6 }
 0x393   :  { %v400_v18 = vpop.f32.mrb[8].mxu1 }
 0x394   :  { %v401_v19 = vadd.f32 %v400_v18, %v341_v17  ;;  %v640_v20 = vpop.f32.mrb[9].mxu1 }
 0x395   :  { %v403_v21 = vpop.f32.mrb[10].mxu1 }
 0x396   :  { %v404_v22 = vadd.f32 %v403_v21, %v341_v17  ;;  %v641_v23 = vpop.f32.mrb[11].mxu1  ;;  %v407_v24 = vmax.f32 %v401_v19, 0.0 }
 0x398   :  { %v408_v25 = vmax.f32 %v404_v22, 0.0 }
 0x39a   :  { %v409_v26 = vpack.c.bf16 %v408_v25, %v407_v24 }
 0x39c   :  { %651 = vmatmul.mubr.msk.bf16.vlgmr.msra.gmra.mrb[8].mxu0 %vm131_vm2, %v409_v26 }
 0x46f   :  { %v483_v29 = vpop.f32.mrb[8].mxu0 }
 0x470   :  { %v484_v30 = vadd.f32 %v483_v29, %v421_v27  ;;  %v652_v31 = vpop.f32.mrb[9].mxu0 }
 0x471   :  { %v486_v33 = vpop.f32.mrb[10].mxu0 }
 0x472   :  { %v490_v34 = vmax.f32 %v484_v30, 0.0  ;;  %v487_v35 = vadd.f32 %v486_v33, %v421_v27  ;;  %v653_v36 = vpop.f32.mrb[11].mxu0 }
 0x474   :  { %v491_v37 = vmax.f32 %v487_v35, 0.0  ;;  %v496_v38 = vmul.f32 %v495_v32, %v490_v34 }
 0x476   :  { %v498_v39 = vsel %vm131_vm2, %v496_v38, 0.0  ;;  %v497_v40 = vmul.f32 %v495_v32, %v491_v37 }
 0x477   :  { %499 = vadd.xlane.f32.xlu0 %v498_v39 }
 0x478   :  { %v501_v41 = vsel %vm131_vm2, %v497_v40, 0.0 }
 0x47b   :  { %502 = vadd.xlane.f32.xlu0 %v501_v41 }
 0x504   :  { %v500_v44 = vpop.xlane.xlu0 %499 }
 0x505   :  { %v508_v45 = vadd.f32 %v507_v43, %v500_v44 }
 0x507   :  { %v565_v46 = vmul.f32 -1.442695, %v508_v45 }
 0x508   :  { %v503_v47 = vpop.xlane.xlu0 %502 }
 0x509   :  { %681 = vpow2.f32 %v565_v46  ;;  %v509_v48 = vadd.f32 %v507_v43, %v503_v47 }
 0x50b   :  { %v566_v49 = vmul.f32 -1.442695, %v509_v48 }
 0x50d   :  { %683 = vpow2.f32 %v566_v49 }
 0x513   :  { %v682_v50 = vpop.eup %681 }
 0x514   :  { %v516_v51 = vadd.f32 1.0, %v682_v50 }
 0x516   :  { %685 = vrcp.f32 %v516_v51 }
 0x517   :  { %v684_v52 = vpop.eup %683 }
 0x518   :  { %v517_v53 = vadd.f32 1.0, %v684_v52 }
 0x51a   :  { %687 = vrcp.f32 %v517_v53 }
 0x520   :  { %v686_v54 = vpop.eup %685 }
 0x521   :  { %523 = vrot.lane.b32.xlu1 %v686_v54, %s691_s2 }
 0x524   :  { %v688_v13 = vpop.eup %687 }
 0x525   :  { %527 = vrot.lane.b32.xlu1 %v688_v13, %s692_s29 }
 0x593   :  { %v524_v15 = vpop.permute.xlu1 %523 }
 0x594   :  { %v530_v55 = vsel %vm302_vm3, %v825_v5, %v524_v15 }
 0x597   :  { %v528_v56 = vpop.permute.xlu1 %527 }
 0x598   :  { %v532_v57 = vsel %vm531_vm6, %v530_v55, %v528_v56 }
 0x599   :  { %v534_v58 = vsel %vm533_vm7, %v532_v57, 0.0 }
 0x59a   :  { %535 = vst [vmem:[%s856_s4] sm:$0xff] %v534_v58 }

</bundles_post_ra>
